<compile_context>
chip_gen: v7x
topology: tpu7x:2x2x1
jax: 0.10.0
libtpu: 0.0.40
codegen_flags: <defaults>
</compile_context>

<pallas_src>
import math

import jax
import jax.numpy as jnp
from jax.experimental import pallas as pl
from jax.experimental.pallas import tpu as pltpu


def _beta_intersection_kernel(a_ref, b_ref, w1t_ref, b1_ref, w2t_ref, b2_ref,
                              o_ref):
    n, bt, d = a_ref.shape

    # Fold (N, B_t) into one tall MXU M dimension; lane-concat alpha/beta so
    # layer 1 is a single K=2D contraction instead of two padded K=D dots.
    a2 = a_ref[...].reshape(n * bt, d)
    b2 = b_ref[...].reshape(n * bt, d)
    x = jnp.concatenate([a2, b2], axis=-1)                          # (M, 2D)

    h = jnp.dot(x, w1t_ref[...], preferred_element_type=jnp.float32) + b1_ref[...]
    h = jnp.maximum(h, 0.0)                                         # (M, 2D)

    logits = (jnp.dot(h, w2t_ref[...], preferred_element_type=jnp.float32)
              + b2_ref[...]).reshape(n, bt, d)                      # (N, B_t, D)

    # Softmax over the conjunct axis (axis 0) without materializing `att`:
    #   sum(att * x, 0) == sum(e * x, 0) * (1 / sum(e, 0))
    m = jnp.max(logits, axis=0, keepdims=True)                      # (1, B_t, D)
    e = jnp.exp(logits - m)                                         # (N, B_t, D)
    inv_den = pl.reciprocal(jnp.sum(e, axis=0), approx=False)       # (B_t, D)

    # Re-read alpha/beta from VMEM here (cheap vld) rather than holding them
    # live across both matmuls — keeps vreg pressure down at large tiles.
    sa = jnp.sum(e * a_ref[...], axis=0) * inv_den                  # (B_t, D)
    sb = jnp.sum(e * b_ref[...], axis=0) * inv_den                  # (B_t, D)

    # Single lane-dense (B_t, 2D) store instead of two masked D-wide stores.
    o_ref[...] = jnp.concatenate([sa, sb], axis=-1)


def _vmem_bytes(n, bt, d):
    """Rough VMEM footprint (lane-padded, double-buffered) for one grid step."""
    lane = 128
    pd = -(-d // lane) * lane
    p2d = -(-(2 * d) // lane) * lane
    in_bytes = n * bt * pd * 4                 # one f32 input tile
    out_bytes = bt * p2d * 4                   # lane-dense output tile
    w_bytes = (2 * d * p2d + 2 * d * pd + p2d + pd) * 4
    # 2 inputs x 2 pipeline buffers, output x 2 buffers, weights, headroom for
    # the f32 h/e intermediates and compiler scratch.
    return 4 * in_bytes + 2 * out_bytes + w_bytes + (8 << 20)


def make_beta_intersection(w1, b1, w2, b2, *, batch_tile=512):
    """Build a batched BetaIntersection forward.

    w1: (2D, 2D), b1: (2D,), w2: (D, 2D), b2: (D,) in PyTorch (out, in) layout.
    Returned callable takes alpha/beta of shape (N, B, D) (or (N, D)).
    """
    two_d = w1.shape[0]
    dim = w2.shape[0]
    assert w1.shape == (two_d, two_d) and w2.shape == (dim, two_d)
    assert two_d == 2 * dim
    assert batch_tile % 8 == 0, "batch_tile must be a multiple of 8 (sublane rule)"

    # One-time parameter prep (NOT in the per-call path): transpose to
    # (in, out) layout, cast to f32, 2-D biases for lane broadcast.
    w1t = jnp.asarray(w1, jnp.float32).T                  # (2D, 2D)
    b1r = jnp.asarray(b1, jnp.float32).reshape(1, two_d)  # (1, 2D)
    w2t = jnp.asarray(w2, jnp.float32).T                  # (2D, D)
    b2r = jnp.asarray(b2, jnp.float32).reshape(1, dim)    # (1, D)

    @jax.jit
    def forward(alpha_embeddings, beta_embeddings):
        squeeze = alpha_embeddings.ndim == 2
        if squeeze:   # unbatched (N, D) convenience path
            alpha_embeddings = alpha_embeddings[:, None, :]
            beta_embeddings = beta_embeddings[:, None, :]
        n, bsz, d = alpha_embeddings.shape
        assert d == dim, "embedding dim must match the module's dim"
        a = alpha_embeddings.astype(jnp.float32)
        b = beta_embeddings.astype(jnp.float32)

        # --- choose the batch tile (all shapes are static under jit) ---
        if bsz > batch_tile:
            bt = batch_tile
        elif bsz >= 16 and bsz % 8 == 0:
            # small batch: split into >=2 grid steps so v7x's 2 TCs both run
            bt = max(8, ((bsz // 2 + 7) // 8) * 8)
        else:
            bt = bsz        # full-dim block (always legal per the (8,128) rule)

        # shrink to a 48 MiB budget (v7x: 64 MiB physical VMEM is the binder)
        budget = 48 << 20
        while _vmem_bytes(n, bt, d) > budget and bt > 8:
            bt = max(8, (((bt // 2) + 7) // 8) * 8)

        grid = (pl.cdiv(bsz, bt),)
        vmem_limit = int(min(max(_vmem_bytes(n, bt, d), 32 << 20), 60 << 20))

        out = pl.pallas_call(
            _beta_intersection_kernel,
            out_shape=jax.ShapeDtypeStruct((bsz, 2 * d), jnp.float32),
            grid=grid,
            in_specs=[
                pl.BlockSpec((n, bt, d), lambda i: (0, i, 0)),       # alpha tile
                pl.BlockSpec((n, bt, d), lambda i: (0, i, 0)),       # beta tile
                # Constant index_maps -> weights/biases stay VMEM-resident.
                pl.BlockSpec((two_d, two_d), lambda i: (0, 0)),      # W1^T
                pl.BlockSpec((1, two_d), lambda i: (0, 0)),          # b1
                pl.BlockSpec((two_d, dim), lambda i: (0, 0)),        # W2^T
                pl.BlockSpec((1, dim), lambda i: (0, 0)),            # b2
            ],
            out_specs=pl.BlockSpec((bt, 2 * d), lambda i: (i, 0)),   # lane-dense
            compiler_params=pltpu.CompilerParams(
                dimension_semantics=("parallel",),   # batch axis: both TCs on v7x
                vmem_limit_bytes=vmem_limit,
            ),
        )(a, b, w1t, b1r, w2t, b2r)

        out_a, out_b = out[:, :d], out[:, d:]
        if squeeze:
            out_a, out_b = out_a[0], out_b[0]
        return out_a, out_b

    return forward


def _reference(alpha, beta, w1, b1, w2, b2):
    all_e = jnp.concatenate([alpha, beta], axis=-1)            # (N, B, 2D)
    h = jax.nn.relu(all_e @ w1.T + b1)                         # (N, B, 2D)
    att = jax.nn.softmax(h @ w2.T + b2, axis=0)                # (N, B, D)
    return jnp.sum(att * alpha, axis=0), jnp.sum(att * beta, axis=0)


if __name__ == "__main__":
    N, B, D = 8, 16, 32        # N conjuncts, B batched queries, hidden dim D
    two_d = 2 * D

    key = jax.random.PRNGKey(0)
    k_a, k_b, k_w1, k_b1, k_w2, k_b2 = jax.random.split(key, 6)

    alpha = jax.random.uniform(k_a, (N, B, D), minval=0.05, maxval=0.95,
                               dtype=jnp.float32)
    beta = jax.random.uniform(k_b, (N, B, D), minval=0.05, maxval=0.95,
                              dtype=jnp.float32)

    # Deterministic parameter init matching the PyTorch module's shapes:
    # layer1: Linear(2D, 2D), layer2: Linear(2D, D); xavier_uniform_ weights,
    # default nn.Linear bias init uniform(-1/sqrt(fan_in), 1/sqrt(fan_in)).
    xav1 = math.sqrt(6.0 / (two_d + two_d))
    xav2 = math.sqrt(6.0 / (two_d + D))
    bias_bound = 1.0 / math.sqrt(two_d)
    w1 = jax.random.uniform(k_w1, (two_d, two_d), minval=-xav1, maxval=xav1,
                            dtype=jnp.float32)
    b1 = jax.random.uniform(k_b1, (two_d,), minval=-bias_bound, maxval=bias_bound,
                            dtype=jnp.float32)
    w2 = jax.random.uniform(k_w2, (D, two_d), minval=-xav2, maxval=xav2,
                            dtype=jnp.float32)
    b2 = jax.random.uniform(k_b2, (D,), minval=-bias_bound, maxval=bias_bound,
                            dtype=jnp.float32)

    forward = make_beta_intersection(w1, b1, w2, b2)
    out_a, out_b = forward(alpha, beta)
    out_a, out_b = jax.block_until_ready((out_a, out_b))

    ref_a, ref_b = _reference(alpha, beta, w1, b1, w2, b2)
    assert out_a.shape == (B, D) and out_b.shape == (B, D)
    assert jnp.allclose(out_a, ref_a, atol=1e-5, rtol=1e-5), "alpha mismatch"
    assert jnp.allclose(out_b, ref_b, atol=1e-5, rtol=1e-5), "beta mismatch"
    print("KERNEL_OK")
</pallas_src>

<mosaic_0001>
module attributes {stable_mosaic.version = 11 : i64} {
  func.func @_beta_intersection_kernel(%arg0: i32, %arg1: memref<8x8x32xf32, #tpu.memory_space<vmem>>, %arg2: memref<8x8x32xf32, #tpu.memory_space<vmem>>, %arg3: memref<64x64xf32, #tpu.memory_space<vmem>>, %arg4: memref<1x64xf32, #tpu.memory_space<vmem>>, %arg5: memref<64x32xf32, #tpu.memory_space<vmem>>, %arg6: memref<1x32xf32, #tpu.memory_space<vmem>>, %arg7: memref<8x64xf32, #tpu.memory_space<vmem>>) attributes {dimension_semantics = [#tpu.dimension_semantics<parallel>], iteration_bounds = array<i64: 2>, scalar_prefetch = 0 : i64, scratch_operands = 0 : i64, tpu.core_type = #tpu.core_type<tc>, window_params = [{transform_indices = @transform_0, window_bounds = array<i64: 8, 8, 32>}, {transform_indices = @transform_1, window_bounds = array<i64: 8, 8, 32>}, {pipeline_mode = #tpu.pipeline_mode<synchronous>, transform_indices = @transform_2, window_bounds = array<i64: 64, 64>}, {pipeline_mode = #tpu.pipeline_mode<synchronous>, transform_indices = @transform_3, window_bounds = array<i64: 1, 64>}, {pipeline_mode = #tpu.pipeline_mode<synchronous>, transform_indices = @transform_4, window_bounds = array<i64: 64, 32>}, {pipeline_mode = #tpu.pipeline_mode<synchronous>, transform_indices = @transform_5, window_bounds = array<i64: 1, 32>}, {transform_indices = @transform_6, window_bounds = array<i64: 8, 64>}]} {
    %c0 = arith.constant 0 : index
    %c0_0 = arith.constant 0 : index
    %c0_1 = arith.constant 0 : index
    %0 = vector.load %arg1[%c0, %c0_0, %c0_1] : memref<8x8x32xf32, #tpu.memory_space<vmem>>, vector<8x8x32xf32>
    %1 = vector.shape_cast %0 : vector<8x8x32xf32> to vector<64x32xf32>
    %c0_2 = arith.constant 0 : index
    %c0_3 = arith.constant 0 : index
    %c0_4 = arith.constant 0 : index
    %2 = vector.load %arg2[%c0_2, %c0_3, %c0_4] : memref<8x8x32xf32, #tpu.memory_space<vmem>>, vector<8x8x32xf32>
    %3 = vector.shape_cast %2 : vector<8x8x32xf32> to vector<64x32xf32>
    %4 = tpu.concatenate %1, %3 in 1 : vector<64x32xf32>, vector<64x32xf32> -> vector<64x64xf32>
    %c0_5 = arith.constant 0 : index
    %c0_6 = arith.constant 0 : index
    %5 = vector.load %arg3[%c0_5, %c0_6] : memref<64x64xf32, #tpu.memory_space<vmem>>, vector<64x64xf32>
    %cst = arith.constant dense<0.000000e+00> : vector<64x64xf32>
    %6 = tpu.matmul %4, %5, %cst {dimension_numbers = #tpu.dot_dimension_numbers<[1], [0], [0], [1], [0, 0, 1, 1], [], []>} : vector<64x64xf32>, vector<64x64xf32>, vector<64x64xf32> -> vector<64x64xf32>
    %c0_7 = arith.constant 0 : index
    %c0_8 = arith.constant 0 : index
    %7 = vector.load %arg4[%c0_7, %c0_8] : memref<1x64xf32, #tpu.memory_space<vmem>>, vector<1x64xf32>
    %8 = vector.broadcast %7 : vector<1x64xf32> to vector<64x64xf32>
    %9 = arith.addf %6, %8 : vector<64x64xf32>
    %cst_9 = arith.constant 0.000000e+00 : f32
    %10 = vector.broadcast %cst_9 : f32 to vector<64x64xf32>
    %11 = arith.maximumf %9, %10 : vector<64x64xf32>
    %c0_10 = arith.constant 0 : index
    %c0_11 = arith.constant 0 : index
    %12 = vector.load %arg5[%c0_10, %c0_11] : memref<64x32xf32, #tpu.memory_space<vmem>>, vector<64x32xf32>
    %cst_12 = arith.constant dense<0.000000e+00> : vector<64x32xf32>
    %13 = tpu.matmul %11, %12, %cst_12 {dimension_numbers = #tpu.dot_dimension_numbers<[1], [0], [0], [1], [0, 0, 1, 1], [], []>} : vector<64x64xf32>, vector<64x32xf32>, vector<64x32xf32> -> vector<64x32xf32>
    %c0_13 = arith.constant 0 : index
    %c0_14 = arith.constant 0 : index
    %14 = vector.load %arg6[%c0_13, %c0_14] : memref<1x32xf32, #tpu.memory_space<vmem>>, vector<1x32xf32>
    %15 = vector.broadcast %14 : vector<1x32xf32> to vector<64x32xf32>
    %16 = arith.addf %13, %15 : vector<64x32xf32>
    %17 = vector.shape_cast %16 : vector<64x32xf32> to vector<8x8x32xf32>
    %cst_15 = arith.constant dense<0xFF800000> : vector<8x32xf32>
    %18 = vector.multi_reduction <maximumf>, %17, %cst_15 [0] : vector<8x8x32xf32> to vector<8x32xf32>
    %19 = vector.shape_cast %18 : vector<8x32xf32> to vector<1x8x32xf32>
    %20 = vector.broadcast %19 : vector<1x8x32xf32> to vector<8x8x32xf32>
    %21 = arith.subf %17, %20 : vector<8x8x32xf32>
    %22 = math.exp %21 : vector<8x8x32xf32>
    %cst_16 = arith.constant dense<0.000000e+00> : vector<8x32xf32>
    %23 = vector.multi_reduction <add>, %22, %cst_16 [0] : vector<8x8x32xf32> to vector<8x32xf32>
    %24 = tpu.reciprocal %23 : vector<8x32xf32> -> vector<8x32xf32>
    %c0_17 = arith.constant 0 : index
    %c0_18 = arith.constant 0 : index
    %c0_19 = arith.constant 0 : index
    %25 = vector.load %arg1[%c0_17, %c0_18, %c0_19] : memref<8x8x32xf32, #tpu.memory_space<vmem>>, vector<8x8x32xf32>
    %26 = arith.mulf %22, %25 : vector<8x8x32xf32>
    %cst_20 = arith.constant dense<0.000000e+00> : vector<8x32xf32>
    %27 = vector.multi_reduction <add>, %26, %cst_20 [0] : vector<8x8x32xf32> to vector<8x32xf32>
    %28 = arith.mulf %27, %24 : vector<8x32xf32>
    %c0_21 = arith.constant 0 : index
    %c0_22 = arith.constant 0 : index
    %c0_23 = arith.constant 0 : index
    %29 = vector.load %arg2[%c0_21, %c0_22, %c0_23] : memref<8x8x32xf32, #tpu.memory_space<vmem>>, vector<8x8x32xf32>
    %30 = arith.mulf %22, %29 : vector<8x8x32xf32>
    %cst_24 = arith.constant dense<0.000000e+00> : vector<8x32xf32>
    %31 = vector.multi_reduction <add>, %30, %cst_24 [0] : vector<8x8x32xf32> to vector<8x32xf32>
    %32 = arith.mulf %31, %24 : vector<8x32xf32>
    %33 = tpu.concatenate %28, %32 in 1 : vector<8x32xf32>, vector<8x32xf32> -> vector<8x64xf32>
    %c0_25 = arith.constant 0 : index
    %c0_26 = arith.constant 0 : index
    %34 = vector.load %arg7[%c0_25, %c0_26] : memref<8x64xf32, #tpu.memory_space<vmem>>, vector<8x64xf32>
    tpu.vector_store %arg7[%c0_25, %c0_26], %33 {strides = array<i32>} : memref<8x64xf32, #tpu.memory_space<vmem>>, vector<8x64xf32>,
    return
  }
  func.func @transform_0(%arg0: i32) -> (i32, i32, i32) {
    %c0_i32 = arith.constant 0 : i32
    %c0_i32_0 = arith.constant 0 : i32
    %c0_i32_1 = arith.constant 0 : i32
    return %c0_i32, %arg0, %c0_i32_0 : i32, i32, i32
  }
  func.func @transform_1(%arg0: i32) -> (i32, i32, i32) {
    %c0_i32 = arith.constant 0 : i32
    %c0_i32_0 = arith.constant 0 : i32
    %c0_i32_1 = arith.constant 0 : i32
    return %c0_i32, %arg0, %c0_i32_0 : i32, i32, i32
  }
  func.func @transform_2(%arg0: i32) -> (i32, i32) {
    %c0_i32 = arith.constant 0 : i32
    %c0_i32_0 = arith.constant 0 : i32
    %c0_i32_1 = arith.constant 0 : i32
    return %c0_i32, %c0_i32_0 : i32, i32
  }
  func.func @transform_3(%arg0: i32) -> (i32, i32) {
    %c0_i32 = arith.constant 0 : i32
    %c0_i32_0 = arith.constant 0 : i32
    %c0_i32_1 = arith.constant 0 : i32
    return %c0_i32, %c0_i32_0 : i32, i32
  }
  func.func @transform_4(%arg0: i32) -> (i32, i32) {
    %c0_i32 = arith.constant 0 : i32
    %c0_i32_0 = arith.constant 0 : i32
    %c0_i32_1 = arith.constant 0 : i32
    return %c0_i32, %c0_i32_0 : i32, i32
  }
  func.func @transform_5(%arg0: i32) -> (i32, i32) {
    %c0_i32 = arith.constant 0 : i32
    %c0_i32_0 = arith.constant 0 : i32
    %c0_i32_1 = arith.constant 0 : i32
    return %c0_i32, %c0_i32_0 : i32, i32
  }
  func.func @transform_6(%arg0: i32) -> (i32, i32) {
    %c0_i32 = arith.constant 0 : i32
    %c0_i32_0 = arith.constant 0 : i32
    return %arg0, %c0_i32 : i32, i32
  }
}

</mosaic_0001>

<bundles_post_ra>
// kernel: forward.1
= control target key start
LH: loop header
LB: loop body
LE: loop exit
PB: predicated region body
PF: predicated region fallthrough
CT: control target
= control target key end

     0   :  { %s1754_s0 = inlined_call_operand.hbm [shape: f32[8,16,32], index: 0, kind: input, shape index: {}]   ;;  %s1755_s1 = inlined_call_operand.hbm [shape: f32[8,16,32], index: 1, kind: input, shape index: {}]   ;;  %s1756_s2 = inlined_call_operand.hbm [shape: f32[64,64], index: 2, kind: input, shape index: {}]   ;;  %s1757_s3 = inlined_call_operand.vmem [shape: f32[1,64], index: 3, kind: input, shape index: {}]   ;;  %s1758_s4 = inlined_call_operand.hbm [shape: f32[64,32], index: 4, kind: input, shape index: {}]   ;;  %s1759_s5 = inlined_call_operand.vmem [shape: f32[1,32], index: 5, kind: input, shape index: {}]   ;;  %s1760_s6 = inlined_call_operand.vmem [shape: f32[16,64], index: 6, kind: output, shape index: {}]  }
   0x1   :  { %1765 = sst [smem:[#allocation13_spill]] %s1754_s0 }
   0x2   :  { %11 = vsyncpa [#allocation3], 0 }
   0x3   :  { %13 = vsyncpa [#allocation3 + $0x1], 0 }
   0x4   :  { %14 = vsyncpa [#allocation5], 0 }
   0x5   :  { %16 = vsyncpa [#allocation5 + $0x1], 0 }
   0x6   :  { %17 = vsyncpa [#allocation8], 0  ;;  %s1356_s21 = smov 0   ;;  %s1358_s22 = smov 0  }
   0x7   :  { %s1360_s23 = smov 0   ;;  %s1362_s24 = smov 0  }
   0x8 LB: > { %s1375_s25 = sadd.s32 4294967295, %s1311_s24   ;;  %s1378_s26 = sadd.s32 1, %s1311_s24   ;;  %s1311_s24 = sphi %s1362_s24, %s1784_s24   ;;  %s1307_s23 = sphi %s1360_s23, %s1783_s23   ;;  %s1303_s22 = sphi %s1358_s22, %s1782_s22   ;;  %s1299_s21 = sphi %s1356_s21, %s1781_s21  }
   0x9   : > { %s27_s27 = ssub.s32 %s1311_s24, %s1378_s26  ;;  %s30_s28 = sadd.s32 1, %s1307_s23 }
   0xa   : > { %p28_p0 = scmp.eq.s32.totalorder %s27_s27, 0  ;;  %p37_p1 = scmp.ne.s32.totalorder %s1307_s23, %s1303_s22 }
   0xb   : > { %p38_p2 = scmp.eq.s32.totalorder %s1311_s24, 0  ;;  %p43_p3 = scmp.ne.s32.totalorder %s1303_s22, %s1299_s21 }
   0xc   : > { %s1388_s29 = scalar_select %p28_p0, %s1307_s23, %s30_s28  }
   0xd   : > { %p1390_p4 = por %p38_p2, %p37_p1  ;;  %p1761_p5 = scmp.eq.s32.totalorder %s1375_s25, 0 }
   0xe   : > { %p908_p6 = scmp.ge.s32.totalorder %s1311_s24, 1  ;;  %p190_p7 = scmp.lt.s32.totalorder %s1311_s24, 3 }
   0xf   : > { %p1399_p8 = por %p1761_p5, %p43_p3  ;;  %s1313_s9 = smov [#allocation6]  }
  0x10   : > { %p1403_p9 = pnand %p908_p6, %p190_p7  ;;  %s202_s10 = sshll.u32 %s1313_s9, 4  ;;  %s203_s10 = int_to_ptr.vmem [resolvable:$true] %s202_s10 }
  0x11   : > { %s1767_s7 = scalar_select %p1399_p8, 1, 0 }
  0x12   : > { %s1768_s8 = scalar_select %p1403_p9, 1, 0 }
  0x13   : > { %p1074_p10 = pneg %p1403_p9  ;;  %p1090_p12 = scmp.lt.s32.totalorder %s1311_s24, 2 }
  0x14   : > { %s1149_s16 = scalar_lea.hbm %s1756_s2, 1024 }
  0x15   : > { %p1411_p11 = pnand %p1074_p10, %p1761_p5  ;;  %p1419_p13 = pnand %p1090_p12, %p1390_p4 }
  0x16   : > { %p1150_p0 = scmp.ne.s32.totalorder %s1756_s2, %s1149_s16  ;;  %p1156_p4 = scmp.lt.u32.totalorder %s1149_s16, %s1756_s2 }
  0x17   : > { %s1770_s13 = scalar_select %p1419_p13, 1, 0 }
  0x18   : > { %p1151_p1 = pneg %p1411_p11 }
  0x1a   : > { %p1152_p2 = pnand %p1151_p1, %p1150_p0 }
  0x1c   : > { %p1153_p3 = pneg %p1152_p2 }
  0x1e   : > { %p1158_p6 = pnand %p1156_p4, %p1153_p3 }
  0x20   : > { %1161 = shalt.err (!%p1158_p6)
}
  0x21   : > { %s1162_s21 = scalar_lea.vmem %s203_s10, 1024  ;;  %p1170_p5 = scmp.lt.s32.totalorder %s203_s10, %s203_s10 }
  0x22   : > { %p1163_p7 = scmp.ne.s32.totalorder %s203_s10, %s1162_s21  ;;  %p1171_p8 = scmp.lt.s32.totalorder %s1162_s21, %s1162_s21 }
  0x24   : > { %p1165_p10 = pnand %p1163_p7, %p1151_p1  ;;  %p1172_p9 = por %p1171_p8, %p1170_p5 }
  0x26   : > { %p1166_p12 = pneg %p1165_p10 }
  0x28   : > { %p1173_p13 = pnand %p1172_p9, %p1166_p12 }
  0x2a   : > { %1176 = shalt.err (!%p1173_p13)
}
  0x2b   : > { %s1314_s27 = smov 128   ;;  %s1315_s28 = smov 8  }
  0x2c   : > { %1077 = dma.hbm_to_vmem [thread:$0]  (!%p1411_p11), %s1756_s2, 1024, %s203_s10, [#allocation5], %s1314_s27, %s1314_s27, %s1315_s28  }
  0x2d   : > { %s1316_s14 = smov [#allocation7]   ;;  %s1177_s18 = scalar_lea.hbm %s1758_s4, 1024 }
  0x2e   : > { %s218_s15 = sshll.u32 %s1316_s14, 4  ;;  %p1178_p5 = scmp.ne.s32.totalorder %s1758_s4, %s1177_s18  ;;  %s219_s15 = int_to_ptr.vmem [resolvable:$true] %s218_s15 }
  0x2f   : > { %p1184_p13 = scmp.lt.u32.totalorder %s1177_s18, %s1758_s4 }
  0x30   : > { %p1180_p8 = pnand %p1178_p5, %p1151_p1 }
  0x32   : > { %p1181_p9 = pneg %p1180_p8 }
  0x34   : > { %p1186_p0 = pnand %p1184_p13, %p1181_p9 }
  0x36   : > { %1189 = shalt.err (!%p1186_p0)
}
  0x37   : > { %s1190_s10 = scalar_lea.vmem %s219_s15, 1024  ;;  %p1198_p6 = scmp.lt.s32.totalorder %s219_s15, %s219_s15 }
  0x38   : > { %p1191_p2 = scmp.ne.s32.totalorder %s219_s15, %s1190_s10  ;;  %p1199_p7 = scmp.lt.s32.totalorder %s1190_s10, %s1190_s10 }
  0x3a   : > { %p1193_p3 = pnand %p1191_p2, %p1151_p1  ;;  %p1200_p10 = por %p1199_p7, %p1198_p6 }
  0x3c   : > { %p1194_p4 = pneg %p1193_p3 }
  0x3e   : > { %p1201_p12 = pnand %p1200_p10, %p1194_p4 }
  0x40   : > { %1204 = shalt.err (!%p1201_p12)
}
  0x41   : > { %1080 = dma.hbm_to_vmem [thread:$0]  (!%p1411_p11), %s1758_s4, 1024, %s219_s15, [#allocation8], %s1314_s27, %s1314_s27, %s1315_s28  }
  0x42   : > { %s1771_s9 = sand.u32 1, %s1307_s23   ;;  %s913_s16 = sshll.u32 %s1311_s24, 7 }
  0x43   : > { %s1473_s14 = sshll.u32 %s1771_s9, 6  ;;  %s1772_s0 = sld [smem:[#allocation13_spill]] }
  0x44   : > { %s239_s19 = scalar_lea.vmem [#allocation2], %s1473_s14  ;;  %s1773_s15 = smov %s1771_s9 }
  0x45   : > { %s245_s20 = sshll.u32 %s239_s19, 4  ;;  %s1488_s21 = scalar_lea.sflag [#allocation3], %s1773_s15  ;;  %s1484_s20 = int_to_ptr.vmem [resolvable:$true] %s245_s20 }
  0x46   : > { %p1774_p1 = scmp.ne.s32.totalorder %s1770_s13, 0 }
  0x48   : > { %p1207_p5 = pneg %p1774_p1 }
  0x49   : > { %s1481_s18 = scalar_lea.hbm %s1772_s0, %s913_s16  ;;  %s1210_s9 = scalar_lea.hbm %s1772_s0, 2048 }
  0x4a   : > { %s1205_s10 = scalar_lea.hbm %s1481_s18, 1024  ;;  %p1211_p13 = scmp.lt.u32.totalorder %s1481_s18, %s1772_s0 }
  0x4b   : > { %p1206_p11 = scmp.ne.s32.totalorder %s1481_s18, %s1205_s10  ;;  %p1212_p0 = scmp.lt.u32.totalorder %s1210_s9, %s1205_s10 }
  0x4c   : > { %p1214_p3 = scmp.lt.u32.totalorder %s1205_s10, %s1481_s18 }
  0x4d   : > { %p1208_p8 = pnand %p1207_p5, %p1206_p11  ;;  %p1213_p2 = por %p1212_p0, %p1211_p13 }
  0x4f   : > { %p1209_p9 = pneg %p1208_p8  ;;  %p1215_p4 = por %p1214_p3, %p1213_p2 }
  0x51   : > { %p1216_p6 = pnand %p1215_p4, %p1209_p9 }
  0x53   : > { %1219 = shalt.err (!%p1216_p6)
}
  0x54   : > { %s1220_s19 = scalar_lea.vmem %s1484_s20, 1024  ;;  %s1317_s15 = smov [#allocation2]  }
  0x55   : > { %p1221_p7 = scmp.ne.s32.totalorder %s1484_s20, %s1220_s19  ;;  %s1225_s12 = sshll.u32 %s1317_s15, 4  ;;  %s1226_s12 = int_to_ptr.vmem [resolvable:$false] %s1225_s12 }
  0x56   : > { %s1227_s30 = scalar_lea.vmem %s1226_s12, 2048  ;;  %p1228_p11 = scmp.lt.s32.totalorder %s1484_s20, %s1226_s12 }
  0x57   : > { %p1223_p10 = pnand %p1221_p7, %p1207_p5  ;;  %p1229_p8 = scmp.lt.s32.totalorder %s1227_s30, %s1220_s19 }
  0x59   : > { %p1224_p12 = pneg %p1223_p10  ;;  %p1230_p13 = por %p1229_p8, %p1228_p11 }
  0x5b   : > { %p1231_p0 = pnand %p1230_p13, %p1224_p12 }
  0x5d   : > { %1234 = shalt.err (!%p1231_p0)
}
  0x5e   : > { %s1318_s10 = smov 256   ;;  %s1524_s17 = scalar_lea.hbm %s1755_s1, %s913_s16 }
  0x5f   : > { %1084 = dma.hbm_to_vmem [thread:$0]  (!%p1774_p1), %s1481_s18, 1024, %s1484_s20, %s1488_s21, %s1318_s10, %s1314_s27, %s1315_s28  }
  0x60   : > { %s259_s19 = scalar_lea.vmem [#allocation4], %s1473_s14  ;;  %s255_s12 = sand.u32 1, %s1311_s24  }
  0x61   : > { %s265_s15 = sshll.u32 %s259_s19, 4  ;;  %s1530_s30 = scalar_lea.sflag [#allocation5], %s255_s12  ;;  %s1527_s15 = int_to_ptr.vmem [resolvable:$true] %s265_s15 }
  0x62   : > { %s1235_s0 = scalar_lea.hbm %s1524_s17, 1024  ;;  %s1240_s20 = scalar_lea.hbm %s1755_s1, 2048 }
  0x63   : > { %p1236_p9 = scmp.ne.s32.totalorder %s1524_s17, %s1235_s0  ;;  %p1241_p4 = scmp.lt.u32.totalorder %s1524_s17, %s1755_s1 }
  0x64   : > { %p1242_p6 = scmp.lt.u32.totalorder %s1240_s20, %s1235_s0  ;;  %p1244_p10 = scmp.lt.u32.totalorder %s1235_s0, %s1524_s17 }
  0x65   : > { %p1238_p2 = pnand %p1236_p9, %p1207_p5 }
  0x66   : > { %p1243_p7 = por %p1242_p6, %p1241_p4 }
  0x67   : > { %p1239_p3 = pneg %p1238_p2 }
  0x68   : > { %p1245_p12 = por %p1244_p10, %p1243_p7 }
  0x6a   : > { %p1246_p11 = pnand %p1245_p12, %p1239_p3 }
  0x6c   : > { %1249 = shalt.err (!%p1246_p11)
}
  0x6d   : > { %s1250_s24 = scalar_lea.vmem %s1527_s15, 1024  ;;  %s1319_s14 = smov [#allocation4]  }
  0x6e   : > { %p1251_p8 = scmp.ne.s32.totalorder %s1527_s15, %s1250_s24  ;;  %s1255_s11 = sshll.u32 %s1319_s14, 4  ;;  %s1256_s11 = int_to_ptr.vmem [resolvable:$false] %s1255_s11 }
  0x6f   : > { %s1257_s19 = scalar_lea.vmem %s1256_s11, 2048  ;;  %p1258_p9 = scmp.lt.s32.totalorder %s1527_s15, %s1256_s11 }
  0x70   : > { %p1253_p13 = pnand %p1251_p8, %p1207_p5  ;;  %p1259_p2 = scmp.lt.s32.totalorder %s1257_s19, %s1250_s24 }
  0x72   : > { %p1254_p0 = pneg %p1253_p13  ;;  %p1260_p4 = por %p1259_p2, %p1258_p9 }
  0x74   : > { %p1261_p6 = pnand %p1260_p4, %p1254_p0 }
  0x76   : > { %1264 = shalt.err (!%p1261_p6)
}
  0x77   : > { %1087 = dma.hbm_to_vmem [thread:$0]  (!%p1774_p1), %s1524_s17, 1024, %s1527_s15, %s1530_s30, %s1318_s10, %s1314_s27, %s1315_s28  }
  0x78   : > { %p1775_p5 = scmp.ne.s32.totalorder %s1768_s8, 0 }
  0x79   : > { %s279_s0 = sand.u32 (!%p1775_p5), 1, %s1303_s22   ;;  %p1776_p3 = scmp.ne.s32.totalorder (!%p1775_p5), %s1767_s7, 0 }
  0x7a   : > { %277 = sbr.rel (%p1775_p5) target bundleno = 873 (0x369), region = 44  ;;  %s917_s12 = sshll.u32 (!%p1775_p5), %s279_s0, 6 }
  0x7b   : > { %s280_s18 = scalar_lea.sflag (!%p1775_p5), [#allocation3], %s279_s0  ;;  %s1562_s16 = scalar_lea.vmem (!%p1775_p5), [#allocation2], %s917_s12 }
  0x81   : > { %1282 = dma.done.wait (%p1776_p3), %s280_s18, 1024  }
  0x82   : > { %1284 = vsyncadd (%p1776_p3), %s280_s18, 4294966272  ;;  %s288_s13 = sand.u32 1, %s1375_s25   ;;  %s1569_s27 = scalar_lea.vmem [#allocation4], %s917_s12 }
  0x83   : > { %s289_s20 = scalar_lea.sflag [#allocation5], %s288_s13 }
  0x84   : > { %1286 = dma.done.wait (%p1776_p3), %s289_s20, 1024  }
  0x85   : > { %1288 = vsyncadd (%p1776_p3), %s289_s20, 4294966272  ;;  %p1777_p1 = scmp.eq.s32.totalorder %s1375_s25, 0 }
  0x87   : > { %1290 = dma.done.wait (%p1777_p1), [#allocation5], 1024   ;;  %p1778_p7 = pmov %p1777_p1 }
  0x88   : > { %p1779_p10 = pmov %p1777_p1 }
  0x89   : > { %1292 = vsyncadd (%p1778_p7), [#allocation5], 4294966272 }
  0x8a   : > { %1294 = dma.done.wait (%p1779_p10), [#allocation8], 1024   ;;  %p1780_p12 = pmov %p1777_p1 }
  0x8b   : > { %v1584_v0 = vld [vmem:[%s1569_s27] sm:$0xff]  ;;  %v1587_v1 = vld [vmem:[%s1569_s27 + $0x10] sm:$0xff]  ;;  %s1320_s7 = smov 32   ;;  %v1594_v3 = vld [vmem:[%s1569_s27 + $0x8] sm:$0xff]  ;;  %vm385_vm0 = vcmask 261120   ;;  %vm409_vm1 = vcmask 523264  }
  0x8c   : > { %1296 = vsyncadd (%p1780_p12), [#allocation8], 4294966272  ;;  %361 = vrot.lane.b32.xlu0 %v1584_v0, %s1320_s7  ;;  %365 = vrot.lane.b32.xlu1 %v1587_v1, %s1320_s7  ;;  %v394_v2 = vld [vmem:[#allocation6] sm:$0xff]  ;;  %v1597_v4 = vld [vmem:[%s1569_s27 + $0x18] sm:$0xff]  ;;  %p333_p11 = scmp.lt.s32.totalorder %s1375_s25, 1 }
  0x8d   : > { %v395_v5 = vld [vmem:[#allocation6 + $0x8] sm:$0xff]  ;;  %v396_v6 = vld [vmem:[#allocation6 + $0x10] sm:$0xff]  ;;  %v397_v7 = vld [vmem:[#allocation6 + $0x18] sm:$0xff] }
  0x8e   : > { %v1030_v8 = vpack.c.bf16 %v395_v5, %v394_v2  ;;  %v1034_v9 = vpack.c.bf16 %v397_v7, %v396_v6  ;;  %v398_v10 = vld [vmem:[#allocation6 + $0x20] sm:$0xff]  ;;  %v399_v11 = vld [vmem:[#allocation6 + $0x28] sm:$0xff]  ;;  %v1610_v14 = vld [vmem:[%s1569_s27 + $0x30] sm:$0xff]  ;;  %s1786_s25 = smov (!%p333_p11, %s1375_s25), 1 }
  0x8f   : > { %v1604_v12 = vld [vmem:[%s1569_s27 + $0x20] sm:$0xff]  ;;  %v1607_v13 = vld [vmem:[%s1569_s27 + $0x28] sm:$0xff]  ;;  %v1038_v15 = vpack.c.bf16 %v399_v11, %v398_v10  ;;  %v549_v18 = vld [vmem:[#allocation7 + $0x10] sm:$0xff]  ;;  %s921_s15 = sshll.u32 %s1786_s25, 3 }
  0x90   : > { %363 = vrot.lane.b32.xlu0 %v1594_v3, %s1320_s7  ;;  %367 = vrot.lane.b32.xlu1 %v1597_v4, %s1320_s7  ;;  %v547_v16 = vld [vmem:[#allocation7] sm:$0xff]  ;;  %v548_v17 = vld [vmem:[#allocation7 + $0x8] sm:$0xff]  ;;  %v400_v19 = vld [vmem:[#allocation6 + $0x30] sm:$0xff]  ;;  %s336_s9 = scalar_lea.vmem %s1760_s6, %s921_s15 }
  0x91   : > { %1031 = vmatprep.subr.bf16.mxu0 %v1030_v8  ;;  %v401_v20 = vld [vmem:[#allocation6 + $0x38] sm:$0xff]  ;;  %v1046_v21 = vpack.c.bf16 %v548_v17, %v547_v16  ;;  %v551_v25 = vld [vmem:[#allocation7 + $0x20] sm:$0xff]  ;;  %v552_v26 = vld [vmem:[#allocation7 + $0x28] sm:$0xff] }
  0x92   : > { %1033 = vmatpush3.bf16.msra.mxu0 %v1030_v8  ;;  %v550_v22 = vld [vmem:[#allocation7 + $0x18] sm:$0xff]  ;;  %v1042_v27 = vpack.c.bf16 %v401_v20, %v400_v19  ;;  %v1054_v28 = vpack.c.bf16 %v552_v26, %v551_v25  ;;  %v1624_v29 = vld [vmem:[%s1562_s16] sm:$0xff]  ;;  %v1629_v33 = vld [vmem:[%s1562_s16 + $0x10] sm:$0xff] }
  0x93   : > { %1035 = vmatprep.subr.bf16.mxu0 %v1034_v9  ;;  %v1617_v23 = vld [vmem:[%s1569_s27 + $0x38] sm:$0xff]  ;;  %v1050_v24 = vpack.c.bf16 %v550_v22, %v549_v18  ;;  %1047 = vmatprep.subr.bf16.mxu1 %v1046_v21  ;;  %v1633_v34 = vld [vmem:[%s1562_s16 + $0x8] sm:$0xff]  ;;  %v1644_v40 = vld [vmem:[%s1562_s16 + $0x20] sm:$0xff] }
  0x94   : > { %369 = vrot.lane.b32.xlu0 %v1604_v12, %s1320_s7  ;;  %371 = vrot.lane.b32.xlu1 %v1607_v13, %s1320_s7  ;;  %v1638_v38 = vld [vmem:[%s1562_s16 + $0x18] sm:$0xff]  ;;  %v1650_v44 = vld [vmem:[%s1562_s16 + $0x28] sm:$0xff]  ;;  %v553_v53 = vld [vmem:[#allocation7 + $0x30] sm:$0xff] }
  0x95   : > { %1049 = vmatpush3.bf16.msra.mxu1 %v1046_v21  ;;  %v1656_v46 = vld [vmem:[%s1562_s16 + $0x30] sm:$0xff]  ;;  %v1662_v50 = vld [vmem:[%s1562_s16 + $0x38] sm:$0xff] }
  0x96   : > { %1037 = vmatpush3.bf16.msra.mxu0 %v1034_v9  ;;  %1051 = vmatprep.subr.bf16.mxu1 %v1050_v24  ;;  %v554_v54 = vld [vmem:[#allocation7 + $0x38] sm:$0xff]  ;;  %v922_v56 = vld [vmem:[%s1757_s3] ss:$0 sm:$0xff] }
  0x97   : > { %1039 = vmatprep.subr.bf16.mxu0 %v1038_v15  ;;  %v1058_v55 = vpack.c.bf16 %v554_v54, %v553_v53 }
  0x98   : > { %373 = vrot.lane.b32.xlu0 %v1610_v14, %s1320_s7  ;;  %375 = vrot.lane.b32.xlu1 %v1617_v23, %s1320_s7 }
  0x99   : > { %1053 = vmatpush3.bf16.msra.mxu1 %v1050_v24 }
  0x9a   : > { %1041 = vmatpush3.bf16.msra.mxu0 %v1038_v15  ;;  %1055 = vmatprep.subr.bf16.mxu1 %v1054_v28 }
  0x9b   : > { %1043 = vmatprep.subr.bf16.mxu0 %v1042_v27 }
  0x9d   : > { %1057 = vmatpush3.bf16.msra.mxu1 %v1054_v28 }
  0x9e   : > { %1045 = vmatpush3.bf16.msra.mxu0 %v1042_v27  ;;  %1059 = vmatprep.subr.bf16.mxu1 %v1058_v55  ;;  %v931_v27 = vld [vmem:[%s1759_s5] ss:$0 sm:$0xff] }
  0xa1   : > { %1061 = vmatpush3.bf16.msra.mxu1 %v1058_v55 }
  0xfe   : > { %v362_v30 = vpop.permute.xlu0 %361  ;;  %v366_v31 = vpop.permute.xlu1 %365 }
  0xff   : > { %v386_v32 = vsel %vm385_vm0, %v1624_v29, %v362_v30  ;;  %v388_v35 = vsel %vm385_vm0, %v1629_v33, %v366_v31 }
 0x100   : > { %990 = vmatprep.mubr.msk.f32.mxu0 %vm409_vm1, %v386_v32 }
 0x102   : > { %v364_v36 = vpop.permute.xlu0 %363  ;;  %v368_v37 = vpop.permute.xlu1 %367 }
 0x103   : > { %v387_v39 = vsel %vm385_vm0, %v1633_v34, %v364_v36  ;;  %v389_v41 = vsel %vm385_vm0, %v1638_v38, %v368_v37 }
 0x104   : > { %991 = vmatmul.mubr.msk.f32.vlgmr.msra.gmra.mrb[0].mxu0 %vm409_vm1, %v387_v39 }
 0x105   : > { %993 = vmatprep.mubr.msk.f32.mxu0 %vm409_vm1, %v388_v35 }
 0x106   : > { %v370_v42 = vpop.permute.xlu0 %369  ;;  %v372_v43 = vpop.permute.xlu1 %371 }
 0x107   : > { %v390_v45 = vsel %vm385_vm0, %v1644_v40, %v370_v42  ;;  %v391_v47 = vsel %vm385_vm0, %v1650_v44, %v372_v43 }
 0x108   : > { %994 = vmatmul.mubr.msk.f32.gmra.mrb[2].mxu0 %vm409_vm1, %v389_v41 }
 0x109   : > { %996 = vmatprep.mubr.msk.f32.mxu0 %vm409_vm1, %v390_v45 }
 0x10a   : > { %v374_v48 = vpop.permute.xlu0 %373  ;;  %v376_v49 = vpop.permute.xlu1 %375 }
 0x10b   : > { %v392_v51 = vsel %vm385_vm0, %v1656_v46, %v374_v48  ;;  %v393_v52 = vsel %vm385_vm0, %v1662_v50, %v376_v49 }
 0x10c   : > { %997 = vmatmul.mubr.msk.f32.gmra.mrb[4].mxu0 %vm409_vm1, %v391_v47 }
 0x10d   : > { %999 = vmatprep.mubr.msk.f32.mxu0 %vm409_vm1, %v392_v51 }
 0x110   : > { %1000 = vmatmul.mubr.msk.f32.gmra.mrb[6].mxu0 %vm409_vm1, %v393_v52 }
 0x1d7   : > { %v992_v57 = vpop.f32.mrb[0].mxu0 }
 0x1d8   : > { %v506_v58 = vadd.f32 %v992_v57, %v922_v56  ;;  %v500_v59 = vpop.f32.mrb[1].mxu0 }
 0x1d9   : > { %v501_v60 = vadd.f32 %v922_v56, %v500_v59 }
 0x1da   : > { %v540_v63 = vmax.f32 %v506_v58, 0.0 }
 0x1db   : > { %v539_v61 = vmax.f32 %v501_v60, 0.0  ;;  %v995_v62 = vpop.f32.mrb[2].mxu0 }
 0x1dc   : > { %v516_v2 = vadd.f32 %v995_v62, %v922_v56  ;;  %v510_v5 = vpop.f32.mrb[3].mxu0 }
 0x1dd   : > { %v511_v6 = vadd.f32 %v922_v56, %v510_v5  ;;  %1018 = vmatprep.mubr.msk.f32.mxu1 %vm409_vm1, %v539_v61 }
 0x1de   : > { %1019 = vmatmul.mubr.msk.f32.vlgmr.msra.gmra.mrb[0].mxu1 %vm409_vm1, %v540_v63  ;;  %v542_v9 = vmax.f32 %v516_v2, 0.0 }
 0x1df   : > { %v541_v7 = vmax.f32 %v511_v6, 0.0  ;;  %v998_v8 = vpop.f32.mrb[4].mxu0 }
 0x1e0   : > { %v526_v10 = vadd.f32 %v998_v8, %v922_v56  ;;  %v520_v11 = vpop.f32.mrb[5].mxu0 }
 0x1e1   : > { %v521_v15 = vadd.f32 %v922_v56, %v520_v11  ;;  %1021 = vmatprep.mubr.msk.f32.mxu1 %vm409_vm1, %v541_v7 }
 0x1e2   : > { %1022 = vmatmul.mubr.msk.f32.gmra.mrb[2].mxu1 %vm409_vm1, %v542_v9  ;;  %v544_v18 = vmax.f32 %v526_v10, 0.0 }
 0x1e3   : > { %v543_v16 = vmax.f32 %v521_v15, 0.0  ;;  %v1001_v17 = vpop.f32.mrb[6].mxu0 }
 0x1e4   : > { %v536_v19 = vadd.f32 %v1001_v17, %v922_v56  ;;  %v530_v20 = vpop.f32.mrb[7].mxu0 }
 0x1e5   : > { %v531_v21 = vadd.f32 %v922_v56, %v530_v20  ;;  %1024 = vmatprep.mubr.msk.f32.mxu1 %vm409_vm1, %v543_v16 }
 0x1e6   : > { %1025 = vmatmul.mubr.msk.f32.gmra.mrb[4].mxu1 %vm409_vm1, %v544_v18  ;;  %v546_v24 = vmax.f32 %v536_v19, 0.0 }
 0x1e7   : > { %v545_v22 = vmax.f32 %v531_v21, 0.0 }
 0x1e9   : > { %1027 = vmatprep.mubr.msk.f32.mxu1 %vm409_vm1, %v545_v22 }
 0x1ea   : > { %1028 = vmatmul.mubr.msk.f32.gmra.mrb[6].mxu1 %vm409_vm1, %v546_v24 }
 0x2b1   : > { %v1020_v25 = vpop.f32.mrb[0].mxu1 }
 0x2b2   : > { %v652_v26 = vpop.f32.mrb[1].mxu1  ;;  %v658_v31 = vadd.f32 %v1020_v25, %v931_v27 }
 0x2b3   : > { %v653_v32 = vadd.f32 %v931_v27, %v652_v26 }
 0x2b4   : > { %v692_v41 = vsel %vm385_vm0, %v658_v31, -inf }
 0x2b5   : > { %v1023_v28 = vpop.f32.mrb[2].mxu1  ;;  %v691_v45 = vsel %vm385_vm0, %v653_v32, -inf }
 0x2b6   : > { %v662_v30 = vpop.f32.mrb[3].mxu1  ;;  %v668_v42 = vadd.f32 %v1023_v28, %v931_v27 }
 0x2b7   : > { %v663_v47 = vadd.f32 %v931_v27, %v662_v30 }
 0x2b8   : > { %v694_v56 = vsel %vm385_vm0, %v668_v42, -inf }
 0x2b9   : > { %v1026_v35 = vpop.f32.mrb[4].mxu1  ;;  %v693_v59 = vsel %vm385_vm0, %v663_v47, -inf }
 0x2ba   : > { %v678_v36 = vadd.f32 %v1026_v35, %v931_v27  ;;  %v672_v37 = vpop.f32.mrb[5].mxu1 }
 0x2bb   : > { %v673_v39 = vadd.f32 %v931_v27, %v672_v37 }
 0x2bc   : > { %v697_v43 = vsel %vm385_vm0, %v678_v36, -inf }
 0x2bd   : > { %v698_v48 = vmax.f32 %v692_v41, %v697_v43  ;;  %v695_v49 = vsel %vm385_vm0, %v673_v39, -inf  ;;  %v1029_v51 = vpop.f32.mrb[6].mxu1 }
 0x2be   : > { %v696_v52 = vmax.f32 %v691_v45, %v695_v49  ;;  %v688_v53 = vadd.f32 %v1029_v51, %v931_v27  ;;  %v682_v54 = vpop.f32.mrb[7].mxu1 }
 0x2bf   : > { %v683_v55 = vadd.f32 %v931_v27, %v682_v54 }
 0x2c0   : > { %v703_v57 = vmax.f32 %v696_v52, %v698_v48  ;;  %v701_v58 = vsel %vm385_vm0, %v688_v53, -inf }
 0x2c1   : > { %v702_v60 = vmax.f32 %v694_v56, %v701_v58  ;;  %v699_v61 = vsel %vm385_vm0, %v683_v55, -inf }
 0x2c2   : > { %v700_v62 = vmax.f32 %v693_v59, %v699_v61 }
 0x2c4   : > { %v704_v63 = vmax.f32 %v700_v62, %v702_v60 }
 0x2c6   : > { %v705_v2 = vmax.f32 %v703_v57, %v704_v63 }
 0x2c8   : > { %v706_v5 = vsub.f32 %v653_v32, %v705_v2  ;;  %v707_v6 = vsub.f32 %v658_v31, %v705_v2  ;;  %v708_v7 = vsub.f32 %v663_v47, %v705_v2  ;;  %v709_v8 = vsub.f32 %v668_v42, %v705_v2 }
 0x2c9   : > { %v710_v9 = vsub.f32 %v673_v39, %v705_v2  ;;  %v712_v10 = vsub.f32 %v683_v55, %v705_v2  ;;  %v711_v11 = vsub.f32 %v678_v36, %v705_v2  ;;  %v713_v15 = vsub.f32 %v688_v53, %v705_v2 }
 0x2ca   : > { %v714_v16 = vmul.f32 1.442695, %v706_v5  ;;  %v716_v17 = vmul.f32 1.442695, %v707_v6  ;;  %v718_v18 = vmul.f32 1.442695, %v708_v7 }
 0x2cb   : > { %v720_v19 = vmul.f32 1.442695, %v709_v8  ;;  %v722_v20 = vmul.f32 1.442695, %v710_v9  ;;  %v724_v21 = vmul.f32 1.442695, %v711_v11 }
 0x2cc   : > { %1131 = vpow2.f32 %v714_v16  ;;  %v726_v22 = vmul.f32 1.442695, %v712_v10  ;;  %v728_v24 = vmul.f32 1.442695, %v713_v15 }
 0x2cd   : > { %1133 = vpow2.f32 %v716_v17 }
 0x2ce   : > { %1135 = vpow2.f32 %v718_v18 }
 0x2cf   : > { %1137 = vpow2.f32 %v720_v19 }
 0x2d0   : > { %1139 = vpow2.f32 %v722_v20 }
 0x2d1   : > { %1141 = vpow2.f32 %v724_v21 }
 0x2d2   : > { %1143 = vpow2.f32 %v726_v22 }
 0x2d3   : > { %1145 = vpow2.f32 %v728_v24 }
 0x2d6   : > { %v1132_v25 = vpop.eup %1131 }
 0x2d7   : > { %v1134_v26 = vpop.eup %1133  ;;  %v730_v27 = vsel %vm385_vm0, %v1132_v25, 0.0  ;;  %v770_v28 = vmul.f32 %v1132_v25, %v1584_v0  ;;  %v746_v54 = vmul.f32 %v1132_v25, %v1624_v29 }
 0x2d8   : > { %v1136_v30 = vpop.eup %1135  ;;  %v731_v31 = vsel %vm385_vm0, %v1134_v26, 0.0  ;;  %v771_v32 = vmul.f32 %v1134_v26, %v1594_v3  ;;  %v747_v57 = vmul.f32 %v1134_v26, %v1633_v34 }
 0x2d9   : > { %v1138_v35 = vpop.eup %1137  ;;  %v732_v36 = vadd.f32 %v731_v31, %v730_v27  ;;  %v772_v37 = vmul.f32 %v1136_v30, %v1587_v1  ;;  %v778_v39 = vsel %vm385_vm0, %v770_v28, 0.0  ;;  %v733_v41 = vsel %vm385_vm0, %v1136_v30, 0.0 }
 0x2da   : > { %v773_v42 = vmul.f32 %v1138_v35, %v1597_v4  ;;  %v779_v43 = vsel %vm385_vm0, %v771_v32, 0.0  ;;  %v1140_v45 = vpop.eup %1139  ;;  %v735_v49 = vsel %vm385_vm0, %v1138_v35, 0.0  ;;  %v748_v63 = vmul.f32 %v1136_v30, %v1629_v33 }
 0x2db   : > { %v734_v47 = vadd.f32 %v733_v41, %v732_v36  ;;  %v780_v0 = vadd.f32 %v779_v43, %v778_v39  ;;  %v1142_v48 = vpop.eup %1141  ;;  %v774_v3 = vmul.f32 %v1140_v45, %v1604_v12  ;;  %v781_v51 = vsel %vm385_vm0, %v772_v37, 0.0 }
 0x2dc   : > { %v1144_v52 = vpop.eup %1143  ;;  %v737_v55 = vsel %vm385_vm0, %v1140_v45, 0.0  ;;  %v775_v4 = vmul.f32 %v1142_v48, %v1607_v13  ;;  %v783_v56 = vsel %vm385_vm0, %v773_v42, 0.0  ;;  %v739_v12 = vsel %vm385_vm0, %v1142_v48, 0.0 }
 0x2dd   : > { %v736_v1 = vadd.f32 %v735_v49, %v734_v47  ;;  %v782_v53 = vadd.f32 %v781_v51, %v780_v0  ;;  %v1146_v58 = vpop.eup %1145  ;;  %v776_v61 = vmul.f32 %v1144_v52, %v1610_v14  ;;  %v785_v62 = vsel %vm385_vm0, %v774_v3, 0.0 }
 0x2de   : > { %v741_v2 = vsel %vm385_vm0, %v1144_v52, 0.0  ;;  %v754_v13 = vsel %vm385_vm0, %v746_v54, 0.0  ;;  %v777_v6 = vmul.f32 %v1146_v58, %v1617_v23  ;;  %v787_v34 = vsel %vm385_vm0, %v775_v4, 0.0 }
 0x2df   : > { %v738_v59 = vadd.f32 %v737_v55, %v736_v1  ;;  %v784_v60 = vadd.f32 %v783_v56, %v782_v53  ;;  %v749_v7 = vmul.f32 %v1138_v35, %v1638_v38  ;;  %v755_v8 = vsel %vm385_vm0, %v747_v57, 0.0 }
 0x2e0   : > { %v756_v10 = vadd.f32 %v755_v8, %v754_v13  ;;  %v743_v11 = vsel %vm385_vm0, %v1146_v58, 0.0  ;;  %v789_v33 = vsel %vm385_vm0, %v776_v61, 0.0  ;;  %v750_v15 = vmul.f32 %v1140_v45, %v1644_v40 }
 0x2e1   : > { %v740_v29 = vadd.f32 %v739_v12, %v738_v59  ;;  %v786_v5 = vadd.f32 %v785_v62, %v784_v60  ;;  %v757_v16 = vsel %vm385_vm0, %v748_v63, 0.0  ;;  %v791_v19 = vsel %vm385_vm0, %v777_v6, 0.0 }
 0x2e2   : > { %v758_v23 = vadd.f32 %v757_v16, %v756_v10  ;;  %v751_v38 = vmul.f32 %v1142_v48, %v1650_v44  ;;  %v759_v20 = vsel %vm385_vm0, %v749_v7, 0.0  ;;  %v752_v24 = vmul.f32 %v1144_v52, %v1656_v46 }
 0x2e3   : > { %v742_v9 = vadd.f32 %v741_v2, %v740_v29  ;;  %v788_v14 = vadd.f32 %v787_v34, %v786_v5  ;;  %v761_v40 = vsel %vm385_vm0, %v750_v15, 0.0  ;;  %v753_v26 = vmul.f32 %v1146_v58, %v1662_v50 }
 0x2e4   : > { %v760_v22 = vadd.f32 %v759_v20, %v758_v23  ;;  %v763_v27 = vsel %vm385_vm0, %v751_v38, 0.0  ;;  %v765_v30 = vsel %vm385_vm0, %v752_v24, 0.0 }
 0x2e5   : > { %v744_v17 = vadd.f32 %v743_v11, %v742_v9  ;;  %v790_v18 = vadd.f32 %v789_v33, %v788_v14  ;;  %v767_v31 = vsel %vm385_vm0, %v753_v26, 0.0 }
 0x2e6   : > { %v762_v25 = vadd.f32 %v761_v40, %v760_v22 }
 0x2e7   : > { %1147 = vrcp.f32 %v744_v17  ;;  %v792_v21 = vadd.f32 %v791_v19, %v790_v18 }
 0x2e8   : > { %v764_v28 = vadd.f32 %v763_v27, %v762_v25 }
 0x2ea   : > { %v766_v44 = vadd.f32 %v765_v30, %v764_v28 }
 0x2ec   : > { %v768_v32 = vadd.f32 %v767_v31, %v766_v44 }
 0x2f1   : > { %v1148_v35 = vpop.eup %1147 }
 0x2f2   : > { %v793_v36 = vmul.f32 %v1148_v35, %v792_v21  ;;  %v769_v37 = vmul.f32 %v1148_v35, %v768_v32 }
 0x2f4   : > { %795 = vrot.lane.b32.xlu0 %v793_v36, %s1320_s7 }
 0x366   : > { %v796_v46 = vpop.permute.xlu0 %795 }
 0x367   : > { %v798_v50 = vsel %vm385_vm0, %v769_v37, %v796_v46 }
 0x368   : > { %799 = vst.msk [vmem:[%s336_s9] sm:$0xff] %vm409_vm1, %v798_v50 }
 0x369 PF: > { %p20_p8 = scmp.ge.s32.totalorder %s1378_s26, 4   ;;  %s1781_s21 = smov %s1303_s22 }
 0x36a   : > { %s1782_s22 = smov %s1307_s23  ;;  %s1783_s23 = smov %s1388_s29 }
 0x36b   : > { %s1784_s24 = smov %s1378_s26  ;;  %22 = sbr.rel (!%p20_p8) target bundleno = 8 (0x8), region = 105 }
 0x372   :  { %819 = vsyncpa [#allocation3], 1 }
 0x373   :  { %821 = vsyncpa [#allocation3 + $0x1], 1 }
 0x374   :  { %822 = vsyncpa [#allocation5], 1 }
 0x375   :  { %824 = vsyncpa [#allocation5 + $0x1], 1 }
 0x376   :  { %825 = vsyncpa [#allocation8], 1 }

</bundles_post_ra>
